<compile_context>
chip_gen: v6e
topology: v6e:2x2x1
jax: 0.10.0
libtpu: 0.0.40
codegen_flags: <defaults>
</compile_context>

<pallas_src>
import functools

import jax
import jax.numpy as jnp
import numpy as np
from jax.experimental import pallas as pl
from jax.experimental.pallas import tpu as pltpu

# Per-block byte budget for the streaming apply kernel (~4 MiB) and the scoped
# VMEM limit we request.  Double-buffered in+out = 4 blocks ~= 16 MiB << 32 MiB,
# which is within v6e/v7x scoped defaults and well under every chip's physical
# VMEM; on v5e (16 MiB scoped default) the explicit limit raises the ceiling.
_APPLY_BLOCK_BYTES = 4 * 1024 * 1024
_STATS_BLOCK_BYTES = 2 * 1024 * 1024
_VMEM_LIMIT_BYTES = 32 * 1024 * 1024

_MIN_SUBLANE = {4: 8, 2: 16, 1: 32}  # itemsize -> minimum sublane tile


def _largest_aligned_divisor(dim, align, max_tile):
    """Largest divisor of `dim` that is a multiple of `align` and <= max_tile.

    Returns None if no such divisor exists (caller falls back to the full dim,
    which is the only other legal block shape).
    """
    best = None
    upper = min(dim, max_tile)
    t = align
    while t <= upper:
        if dim % t == 0:
            best = t
        t += align
    return best


# -----------------------------------------------------------------------------
# Kernel 1: data-dependent initialization (runs once, on the first forward)
#   loc   = -mean_c(x)
#   scale = 1 / (std_c(x) + 1e-6)      (unbiased std, like torch.std)
#
# Tiled grid reduction over (batch-blocks, spatial-tiles).  Per-channel shifted
# sums (shift = first per-channel sample) accumulate in lane-wide VMEM scratch;
# one cross-lane reduce + sqrt in the finalize step.  Shifting makes the
# single-pass variance numerically safe when |mean| >> std.
# -----------------------------------------------------------------------------
def _stats_kernel(x_ref, loc_ref, scale_ref, shift_sc, sum_sc, sq_sc, *, m_total):
    b = pl.program_id(0)
    s = pl.program_id(1)

    @pl.when((b == 0) & (s == 0))
    def _init():
        shift_sc[...] = x_ref[0, :, 0:1].astype(jnp.float32)   # (C, 1)
        sum_sc[...] = jnp.zeros_like(sum_sc)
        sq_sc[...] = jnp.zeros_like(sq_sc)

    x = x_ref[...].astype(jnp.float32)          # (nb, C, tm)
    d = x - shift_sc[...]                       # (C,1) broadcasts over (nb,C,tm)
    sum_sc[...] += jnp.sum(d, axis=0)           # fold batch sub-block in-kernel
    sq_sc[...] += jnp.sum(d * d, axis=0)

    @pl.when((b == pl.num_programs(0) - 1) & (s == pl.num_programs(1) - 1))
    def _finalize():
        tot = jnp.sum(sum_sc[...], axis=1, keepdims=True)      # (C, 1)
        tot_sq = jnp.sum(sq_sc[...], axis=1, keepdims=True)    # (C, 1)
        mean_d = tot / m_total
        # Unbiased variance of the shifted samples (== variance of x).
        var = (tot_sq - m_total * mean_d * mean_d) / (m_total - 1)
        std = jnp.sqrt(jnp.maximum(var, 0.0))
        mean = shift_sc[...] + mean_d
        loc_ref[...] = -mean
        scale_ref[...] = 1.0 / (std + 1e-6)


def actnorm_stats(x):
    """x: (N, C, H, W) -> (loc, scale) each of shape (C, 1), float32."""
    n, c, h, w = x.shape
    m = h * w
    itemsize = jnp.dtype(x.dtype).itemsize
    x3d = x.reshape(n, c, m)                    # free view of NCHW

    # Lane tile: capped at 512 so the (C, tm) f32 accumulators stay small even
    # for large C; fall back to full m only if m has no 128-aligned divisor.
    tm = _largest_aligned_divisor(m, 128, 512)
    if tm is None:
        tm = m
    # Batch sub-block: grow the per-step DMA (important when C < 8 and the
    # (C, tm) slab underfills sublanes) while keeping the block ~<= 2 MiB.
    max_nb = max(1, _STATS_BLOCK_BYTES // max(1, c * tm * itemsize))
    nb = 1
    for cand in range(1, min(n, max_nb) + 1):
        if n % cand == 0:
            nb = cand

    grid = (n // nb, m // tm)
    kernel = functools.partial(_stats_kernel, m_total=n * m)
    return pl.pallas_call(
        kernel,
        grid=grid,
        out_shape=(
            jax.ShapeDtypeStruct((c, 1), jnp.float32),
            jax.ShapeDtypeStruct((c, 1), jnp.float32),
        ),
        in_specs=[pl.BlockSpec((nb, c, tm), lambda b, s: (b, 0, s))],
        out_specs=(
            pl.BlockSpec((c, 1), lambda b, s: (0, 0)),
            pl.BlockSpec((c, 1), lambda b, s: (0, 0)),
        ),
        scratch_shapes=[
            pltpu.VMEM((c, 1), jnp.float32),    # shift
            pltpu.VMEM((c, tm), jnp.float32),   # sum of shifted samples
            pltpu.VMEM((c, tm), jnp.float32),   # sum of squared shifted samples
        ],
        compiler_params=pltpu.CompilerParams(
            dimension_semantics=("arbitrary", "arbitrary"),
            vmem_limit_bytes=_VMEM_LIMIT_BYTES),
    )(x3d)


# -----------------------------------------------------------------------------
# Kernel 2: affine transform (hot path, pure mem-bound streaming)
#   out = scale * (x + loc)    broadcast per channel
# Operates on the free (N*C, H*W) view with per-row (tiny) loc/scale vectors.
# Loads/stores stay in the input dtype; compute is upcast to f32 in-register
# (keeps v5e correct and bf16 HBM traffic halved on v6e/v7x).
# -----------------------------------------------------------------------------
def _apply_kernel(x_ref, loc_ref, scale_ref, out_ref):
    x = x_ref[...].astype(jnp.float32)
    out_ref[...] = (scale_ref[...] * (x + loc_ref[...])).astype(out_ref.dtype)


def _pick_apply_tiles(rows, m, itemsize):
    min_sub = _MIN_SUBLANE.get(itemsize, 8)

    # Lane tile: multiple of 128 (unmasked vst), capped at 4096 lanes and by
    # the byte budget at the minimum sublane count.
    max_tm = min(4096, max(128, _APPLY_BLOCK_BYTES // (min_sub * itemsize)))
    tm = _largest_aligned_divisor(m, 128, max_tm)
    if tm is None:
        tm = m  # no 128-aligned divisor; full-dim block is the only legal shape

    # Sublane tile: multiple of the dtype's minimum sublane tile, sized so the
    # whole block stays within the byte budget.
    max_tr = max(min_sub, _APPLY_BLOCK_BYTES // max(1, tm * itemsize))
    tr = _largest_aligned_divisor(rows, min_sub, max_tr)
    if tr is None:
        tr = rows

    # v7x has 2 TensorCores: if both parallel grid axes would collapse to a
    # single step, try splitting the row axis so the grid can shard.
    if rows // tr == 1 and m // tm == 1:
        split = _largest_aligned_divisor(rows, min_sub, max(min_sub, rows // 2))
        if split is not None and split < rows:
            tr = split
    return tr, tm


def actnorm_apply(x, loc_c, scale_c, *, donate_x=False):
    """x: (N, C, H, W); loc_c/scale_c: (C, 1) float32.  Returns (N, C, H, W)."""
    n, c, h, w = x.shape
    rows, m = n * c, h * w
    itemsize = jnp.dtype(x.dtype).itemsize
    x2d = x.reshape(rows, m)                    # free view, no transpose
    loc_r = jnp.tile(loc_c, (n, 1)).astype(jnp.float32)     # (N*C, 1)
    scale_r = jnp.tile(scale_c, (n, 1)).astype(jnp.float32)

    tr, tm = _pick_apply_tiles(rows, m, itemsize)
    grid = (rows // tr, m // tm)

    kwargs = {}
    if donate_x:
        # Caller guarantees x is dead after this call (typical in a flow
        # stack): alias the output onto the input buffer to halve peak HBM.
        kwargs["input_output_aliases"] = {0: 0}

    # TODO(synk): if a v7x profile shows exposed DMA at these block sizes, add
    # pipeline_mode=pl.Buffered(3) on the x BlockSpec (budget allows one more).
    out2d = pl.pallas_call(
        _apply_kernel,
        grid=grid,
        out_shape=jax.ShapeDtypeStruct((rows, m), x.dtype),
        in_specs=[
            pl.BlockSpec((tr, tm), lambda i, j: (i, j)),
            pl.BlockSpec((tr, 1), lambda i, j: (i, 0)),
            pl.BlockSpec((tr, 1), lambda i, j: (i, 0)),
        ],
        out_specs=pl.BlockSpec((tr, tm), lambda i, j: (i, j)),
        compiler_params=pltpu.CompilerParams(
            dimension_semantics=("parallel", "parallel"),
            vmem_limit_bytes=_VMEM_LIMIT_BYTES),
        **kwargs,
    )(x2d, loc_r, scale_r)
    return out2d.reshape(n, c, h, w)


# -----------------------------------------------------------------------------
# Thin stateful wrapper mirroring the PyTorch module semantics.
# -----------------------------------------------------------------------------
class ActNorm:
    def __init__(self, in_channel, log_det=True):
        self.loc = jnp.zeros((1, in_channel, 1, 1), jnp.float32)
        self.scale = jnp.ones((1, in_channel, 1, 1), jnp.float32)
        self.initialized = False
        self.log_det = log_det

    def __call__(self, x):
        n, c, h, w = x.shape

        if not self.initialized:
            loc_c, scale_c = actnorm_stats(x)
            self.loc = loc_c.reshape(1, c, 1, 1)
            self.scale = scale_c.reshape(1, c, 1, 1)
            self.initialized = True

        loc_c = self.loc.reshape(c, 1)
        scale_c = self.scale.reshape(c, 1)

        out = actnorm_apply(x, loc_c, scale_c)

        # log-determinant: trivial O(C) scalar work, kept out of the hot kernel.
        logdet = jnp.float32(h * w) * jnp.sum(jnp.log(jnp.abs(scale_c)))
        logdet_vec = jnp.full((n,), logdet, dtype=jnp.float32)

        if self.log_det:
            return out, logdet_vec
        return out

    def reverse(self, output):
        # pure-JAX glue (not a hot path)
        return output / self.scale - self.loc


# -----------------------------------------------------------------------------
# Pure-JAX reference (mirrors the torch forward) for a sanity check.
# -----------------------------------------------------------------------------
def _reference_forward(x):
    n, c, h, w = x.shape
    flat = jnp.transpose(x, (1, 0, 2, 3)).reshape(c, -1).astype(jnp.float32)
    mean = jnp.mean(flat, axis=1)
    std = jnp.std(flat, axis=1, ddof=1)  # torch.std is unbiased
    loc = (-mean).reshape(1, c, 1, 1)
    scale = (1.0 / (std + 1e-6)).reshape(1, c, 1, 1)
    out = (scale * (x.astype(jnp.float32) + loc)).astype(x.dtype)
    logdet = h * w * jnp.sum(jnp.log(jnp.abs(scale)))
    return out, jnp.full((n,), logdet, dtype=jnp.float32)


if __name__ == "__main__":
    key = jax.random.PRNGKey(0)
    n, c, h, w = 2, 4, 16, 16
    x = jax.random.normal(key, (n, c, h, w), dtype=jnp.float32) * 2.0 + 0.5

    actnorm = ActNorm(in_channel=c, log_det=True)
    out, log_det = actnorm(x)
    out = jax.block_until_ready(out)
    log_det = jax.block_until_ready(log_det)

    ref_out, ref_logdet = _reference_forward(x)
    assert out.shape == (n, c, h, w) and log_det.shape == (n,)
    assert np.allclose(np.asarray(out), np.asarray(ref_out), atol=1e-4, rtol=1e-4)
    assert np.allclose(np.asarray(log_det), np.asarray(ref_logdet), atol=1e-4, rtol=1e-4)

    # bf16 smoke test for the hot apply kernel (exercises the explicit dtype
    # cast on the store path); init stats are reused from the f32 pass.
    loc_c = actnorm.loc.reshape(c, 1)
    scale_c = actnorm.scale.reshape(c, 1)
    out_bf16 = jax.block_until_ready(
        actnorm_apply(x.astype(jnp.bfloat16), loc_c, scale_c))
    assert out_bf16.dtype == jnp.bfloat16
    assert np.allclose(np.asarray(out_bf16, dtype=np.float32),
                       np.asarray(ref_out), atol=5e-2, rtol=5e-2)

    print("KERNEL_OK")
</pallas_src>

<mosaic_0001>
module attributes {stable_mosaic.version = 11 : i64} {
  func.func @_stats_kernel(%arg0: i32, %arg1: i32, %arg2: memref<2x4x256xf32, #tpu.memory_space<vmem>>, %arg3: memref<4x1xf32, #tpu.memory_space<vmem>>, %arg4: memref<4x1xf32, #tpu.memory_space<vmem>>, %arg5: memref<4x1xf32, #tpu.memory_space<vmem>>, %arg6: memref<4x256xf32, #tpu.memory_space<vmem>>, %arg7: memref<4x256xf32, #tpu.memory_space<vmem>>) attributes {dimension_semantics = [#tpu.dimension_semantics<arbitrary>, #tpu.dimension_semantics<arbitrary>], iteration_bounds = array<i64: 1, 1>, scalar_prefetch = 0 : i64, scratch_operands = 3 : i64, tpu.core_type = #tpu.core_type<tc>, window_params = [{transform_indices = @transform_0, window_bounds = array<i64: 2, 4, 256>}, {pipeline_mode = #tpu.pipeline_mode<synchronous>, transform_indices = @transform_1, window_bounds = array<i64: 4, 1>}, {pipeline_mode = #tpu.pipeline_mode<synchronous>, transform_indices = @transform_2, window_bounds = array<i64: 4, 1>}]} {
    %c0_i32 = arith.constant 0 : i32
    %0 = arith.cmpi eq, %arg0, %c0_i32 : i32
    %c0_i32_0 = arith.constant 0 : i32
    %1 = arith.cmpi eq, %arg1, %c0_i32_0 : i32
    %2 = arith.andi %0, %1 : i1
    %3 = arith.extui %2 : i1 to i32
    %c0_i32_1 = arith.constant 0 : i32
    %4 = arith.cmpi ne, %3, %c0_i32_1 : i32
    scf.if %4 {
      %c0_18 = arith.constant 0 : index
      %c0_19 = arith.constant 0 : index
      %c0_20 = arith.constant 0 : index
      %24 = vector.load %arg2[%c0_18, %c0_19, %c0_20] : memref<2x4x256xf32, #tpu.memory_space<vmem>>, vector<1x4x1xf32>
      %25 = vector.shape_cast %24 : vector<1x4x1xf32> to vector<4x1xf32>
      %c0_21 = arith.constant 0 : index
      %c0_22 = arith.constant 0 : index
      %26 = vector.load %arg5[%c0_21, %c0_22] : memref<4x1xf32, #tpu.memory_space<vmem>>, vector<4x1xf32>
      tpu.vector_store %arg5[%c0_21, %c0_22], %25 {strides = array<i32>} : memref<4x1xf32, #tpu.memory_space<vmem>>, vector<4x1xf32>,
      %cst_23 = arith.constant 0.000000e+00 : f32
      %27 = vector.broadcast %cst_23 : f32 to vector<4x256xf32>
      %c0_24 = arith.constant 0 : index
      %c0_25 = arith.constant 0 : index
      %28 = vector.load %arg6[%c0_24, %c0_25] : memref<4x256xf32, #tpu.memory_space<vmem>>, vector<4x256xf32>
      tpu.vector_store %arg6[%c0_24, %c0_25], %27 {strides = array<i32>} : memref<4x256xf32, #tpu.memory_space<vmem>>, vector<4x256xf32>,
      %cst_26 = arith.constant 0.000000e+00 : f32
      %29 = vector.broadcast %cst_26 : f32 to vector<4x256xf32>
      %c0_27 = arith.constant 0 : index
      %c0_28 = arith.constant 0 : index
      %30 = vector.load %arg7[%c0_27, %c0_28] : memref<4x256xf32, #tpu.memory_space<vmem>>, vector<4x256xf32>
      tpu.vector_store %arg7[%c0_27, %c0_28], %29 {strides = array<i32>} : memref<4x256xf32, #tpu.memory_space<vmem>>, vector<4x256xf32>,
    } else {
    }
    %c0 = arith.constant 0 : index
    %c0_2 = arith.constant 0 : index
    %c0_3 = arith.constant 0 : index
    %5 = vector.load %arg2[%c0, %c0_2, %c0_3] : memref<2x4x256xf32, #tpu.memory_space<vmem>>, vector<2x4x256xf32>
    %c0_4 = arith.constant 0 : index
    %c0_5 = arith.constant 0 : index
    %6 = vector.load %arg5[%c0_4, %c0_5] : memref<4x1xf32, #tpu.memory_space<vmem>>, vector<4x1xf32>
    %7 = vector.shape_cast %6 : vector<4x1xf32> to vector<1x4x1xf32>
    %8 = vector.broadcast %7 : vector<1x4x1xf32> to vector<2x4x256xf32>
    %9 = arith.subf %5, %8 : vector<2x4x256xf32>
    %c0_6 = arith.constant 0 : index
    %c0_7 = arith.constant 0 : index
    %10 = vector.load %arg6[%c0_6, %c0_7] : memref<4x256xf32, #tpu.memory_space<vmem>>, vector<4x256xf32>
    %cst = arith.constant dense<0.000000e+00> : vector<4x256xf32>
    %11 = vector.multi_reduction <add>, %9, %cst [0] : vector<2x4x256xf32> to vector<4x256xf32>
    %12 = arith.addf %10, %11 : vector<4x256xf32>
    %c0_8 = arith.constant 0 : index
    %c0_9 = arith.constant 0 : index
    %13 = vector.load %arg6[%c0_8, %c0_9] : memref<4x256xf32, #tpu.memory_space<vmem>>, vector<4x256xf32>
    tpu.vector_store %arg6[%c0_8, %c0_9], %12 {strides = array<i32>} : memref<4x256xf32, #tpu.memory_space<vmem>>, vector<4x256xf32>,
    %c0_10 = arith.constant 0 : index
    %c0_11 = arith.constant 0 : index
    %14 = vector.load %arg7[%c0_10, %c0_11] : memref<4x256xf32, #tpu.memory_space<vmem>>, vector<4x256xf32>
    %15 = arith.mulf %9, %9 : vector<2x4x256xf32>
    %cst_12 = arith.constant dense<0.000000e+00> : vector<4x256xf32>
    %16 = vector.multi_reduction <add>, %15, %cst_12 [0] : vector<2x4x256xf32> to vector<4x256xf32>
    %17 = arith.addf %14, %16 : vector<4x256xf32>
    %c0_13 = arith.constant 0 : index
    %c0_14 = arith.constant 0 : index
    %18 = vector.load %arg7[%c0_13, %c0_14] : memref<4x256xf32, #tpu.memory_space<vmem>>, vector<4x256xf32>
    tpu.vector_store %arg7[%c0_13, %c0_14], %17 {strides = array<i32>} : memref<4x256xf32, #tpu.memory_space<vmem>>, vector<4x256xf32>,
    %c0_i32_15 = arith.constant 0 : i32
    %19 = arith.cmpi eq, %arg0, %c0_i32_15 : i32
    %c0_i32_16 = arith.constant 0 : i32
    %20 = arith.cmpi eq, %arg1, %c0_i32_16 : i32
    %21 = arith.andi %19, %20 : i1
    %22 = arith.extui %21 : i1 to i32
    %c0_i32_17 = arith.constant 0 : i32
    %23 = arith.cmpi ne, %22, %c0_i32_17 : i32
    scf.if %23 {
      %c0_18 = arith.constant 0 : index
      %c0_19 = arith.constant 0 : index
      %24 = vector.load %arg6[%c0_18, %c0_19] : memref<4x256xf32, #tpu.memory_space<vmem>>, vector<4x256xf32>
      %cst_20 = arith.constant dense<0.000000e+00> : vector<4xf32>
      %25 = vector.multi_reduction <add>, %24, %cst_20 [1] : vector<4x256xf32> to vector<4xf32>
      %26 = vector.shape_cast %25 : vector<4xf32> to vector<4x1xf32>
      %c0_21 = arith.constant 0 : index
      %c0_22 = arith.constant 0 : index
      %27 = vector.load %arg7[%c0_21, %c0_22] : memref<4x256xf32, #tpu.memory_space<vmem>>, vector<4x256xf32>
      %cst_23 = arith.constant dense<0.000000e+00> : vector<4xf32>
      %28 = vector.multi_reduction <add>, %27, %cst_23 [1] : vector<4x256xf32> to vector<4xf32>
      %29 = vector.shape_cast %28 : vector<4xf32> to vector<4x1xf32>
      %cst_24 = arith.constant 5.120000e+02 : f32
      %30 = vector.broadcast %cst_24 : f32 to vector<4x1xf32>
      %31 = arith.divf %26, %30 : vector<4x1xf32>
      %cst_25 = arith.constant 5.120000e+02 : f32
      %32 = vector.broadcast %cst_25 : f32 to vector<4x1xf32>
      %33 = arith.mulf %32, %31 : vector<4x1xf32>
      %34 = arith.mulf %33, %31 : vector<4x1xf32>
      %35 = arith.subf %29, %34 : vector<4x1xf32>
      %cst_26 = arith.constant 5.110000e+02 : f32
      %36 = vector.broadcast %cst_26 : f32 to vector<4x1xf32>
      %37 = arith.divf %35, %36 : vector<4x1xf32>
      %cst_27 = arith.constant 0.000000e+00 : f32
      %38 = vector.broadcast %cst_27 : f32 to vector<4x1xf32>
      %39 = arith.maximumf %37, %38 : vector<4x1xf32>
      %40 = math.sqrt %39 : vector<4x1xf32>
      %c0_28 = arith.constant 0 : index
      %c0_29 = arith.constant 0 : index
      %41 = vector.load %arg5[%c0_28, %c0_29] : memref<4x1xf32, #tpu.memory_space<vmem>>, vector<4x1xf32>
      %42 = arith.addf %41, %31 : vector<4x1xf32>
      %cst_30 = arith.constant 0.000000e+00 : f32
      %43 = vector.broadcast %cst_30 : f32 to vector<4x1xf32>
      %44 = arith.subf %43, %42 : vector<4x1xf32>
      %c0_31 = arith.constant 0 : index
      %c0_32 = arith.constant 0 : index
      %45 = vector.load %arg3[%c0_31, %c0_32] : memref<4x1xf32, #tpu.memory_space<vmem>>, vector<4x1xf32>
      tpu.vector_store %arg3[%c0_31, %c0_32], %44 {strides = array<i32>} : memref<4x1xf32, #tpu.memory_space<vmem>>, vector<4x1xf32>,
      %cst_33 = arith.constant 9.99999997E-7 : f32
      %46 = vector.broadcast %cst_33 : f32 to vector<4x1xf32>
      %47 = arith.addf %40, %46 : vector<4x1xf32>
      %cst_34 = arith.constant 1.000000e+00 : f32
      %48 = vector.broadcast %cst_34 : f32 to vector<4x1xf32>
      %49 = arith.divf %48, %47 : vector<4x1xf32>
      %c0_35 = arith.constant 0 : index
      %c0_36 = arith.constant 0 : index
      %50 = vector.load %arg4[%c0_35, %c0_36] : memref<4x1xf32, #tpu.memory_space<vmem>>, vector<4x1xf32>
      tpu.vector_store %arg4[%c0_35, %c0_36], %49 {strides = array<i32>} : memref<4x1xf32, #tpu.memory_space<vmem>>, vector<4x1xf32>,
    } else {
    }
    return
  }
  func.func @transform_0(%arg0: i32, %arg1: i32) -> (i32, i32, i32) {
    %c0_i32 = arith.constant 0 : i32
    %c0_i32_0 = arith.constant 0 : i32
    return %arg0, %c0_i32, %arg1 : i32, i32, i32
  }
  func.func @transform_1(%arg0: i32, %arg1: i32) -> (i32, i32) {
    %c0_i32 = arith.constant 0 : i32
    %c0_i32_0 = arith.constant 0 : i32
    %c0_i32_1 = arith.constant 0 : i32
    return %c0_i32, %c0_i32_0 : i32, i32
  }
  func.func @transform_2(%arg0: i32, %arg1: i32) -> (i32, i32) {
    %c0_i32 = arith.constant 0 : i32
    %c0_i32_0 = arith.constant 0 : i32
    %c0_i32_1 = arith.constant 0 : i32
    return %c0_i32, %c0_i32_0 : i32, i32
  }
}

</mosaic_0001>

<bundles_post_ra>
// kernel: tpu_custom_call.1
= control target key start
LH: loop header
LB: loop body
LE: loop exit
PB: predicated region body
PF: predicated region fallthrough
CT: control target
= control target key end

     0   :  { %8 = vsyncpa [#allocation6], 0  ;;  %s180_s9 = smov [#allocation5]   ;;  %s224_s0 = inlined_call_operand.hbm [shape: f32[2,4,256], index: 0, kind: input, shape index: {}]   ;;  %s225_s1 = inlined_call_operand.vmem [shape: f32[4,1], index: 1, kind: output, shape index: {0}]   ;;  %s226_s2 = inlined_call_operand.vmem [shape: f32[4,1], index: 2, kind: output, shape index: {1}]  }
   0x1   :  { %s14_s10 = sshll.u32 %s180_s9, 4  ;;  %s15_s10 = int_to_ptr.vmem [resolvable:$true] %s14_s10 }
   0x2   :  { %s166_s11 = scalar_lea.vmem %s15_s10, 256  ;;  %p171_p1 = scmp.lt.s32.totalorder %s15_s10, %s15_s10 }
   0x3   :  { %p167_p0 = scmp.ne.s32.totalorder %s15_s10, %s166_s11  ;;  %p172_p2 = scmp.lt.s32.totalorder %s166_s11, %s166_s11 }
   0x5   :  { %p173_p3 = por %p172_p2, %p171_p1 }
   0x7   :  { %p174_p4 = pnand %p173_p3, %p167_p0 }
   0x9   :  { %177 = shalt.err (!%p174_p4)
}
   0xa   :  { %s181_s12 = smov 128   ;;  %s182_s13 = smov 8  }
   0xb   :  { %20 = dma.hbm_to_vmem [thread:$0]  %s224_s0, 256, %s15_s10, [#allocation6], %s181_s12, %s181_s12, %s182_s13  }
   0xc   :  { %178 = dma.done.wait [#allocation6], 256  }
   0xd   :  { %179 = vsyncadd [#allocation6], 4294967040  ;;  %v183_v0 = vmov 0   ;;  %vm31_vm0 = vcmask 3072   ;;  %v30_v1 = vld [vmem:[#allocation5] sm:$0xf]  ;;  %v45_v5 = vlaneseq }
   0xe   :  { %153 = vset.pattern.permute.xlu0 %v183_v0  ;;  %32 = vst.msk [vmem:[#allocation2] sm:$0xf] %vm31_vm0, %v30_v1  ;;  %v184_v3 = vmov 839922192   ;;  %v35_v9 = vld [vmem:[#allocation5] sm:$0xff]  ;;  %v36_v10 = vld [vmem:[#allocation5 + $0x8] sm:$0xff] }
   0xf   :  { %v43_v4 = vunpack.c.l.s4 %v184_v3  ;;  %v46_v7 = vshrl.u32 %v45_v5, 7  ;;  %vm59_vm1 = vcmask 1043456  }
  0x11   :  { %v44_v6 = vunpack.c.0.s8 %v43_v4 }
  0x13   :  { %v47_v8 = vsub.s32 %v44_v6, %v46_v7 }
  0x15   :  { %v37_v2 = vld [vmem:[#allocation2] sm:$0xf] }
  0x16   :  { %40 = vperm.xlu0 %153, %v37_v2   ;;  %v128_v43 = vld [vmem:[#allocation2] sm:$0xf] }
  0x91   :  { %v41_v11 = vpop.permute.xlu0 %40 }
  0x92   :  { %v48_v12 = vrot.slane %v41_v11, %v47_v8 }
  0x94   :  { %v50_v13 = vsub.f32 %v35_v9, %v48_v12  ;;  %v51_v14 = vsub.f32 %v36_v10, %v48_v12 }
  0x96   :  { %v55_v15 = vcombine.high %v50_v13, %v50_v13  ;;  %v56_v16 = vcombine.high %v51_v14, %v51_v14  ;;  %v60_v17 = vsel %vm59_vm1, %v50_v13, 0.0  ;;  %v61_v18 = vsel %vm59_vm1, %v51_v14, 0.0 }
  0x97   :  { %v73_v19 = vmul.f32 %v50_v13, %v50_v13  ;;  %v74_v20 = vmul.f32 %v51_v14, %v51_v14  ;;  %v62_v23 = vadd.f32 %v61_v18, %v60_v17 }
  0x98   :  { %v63_v21 = vsel %vm59_vm1, %v55_v15, 0.0  ;;  %v64_v22 = vsel %vm59_vm1, %v56_v16, 0.0 }
  0x99   :  { %v65_v24 = vadd.f32 %v64_v22, %v63_v21  ;;  %v77_v25 = vcombine.high %v73_v19, %v73_v19  ;;  %v78_v26 = vcombine.high %v74_v20, %v74_v20  ;;  %v81_v27 = vsel %vm59_vm1, %v73_v19, 0.0 }
  0x9a   :  { %v82_v28 = vsel %vm59_vm1, %v74_v20, 0.0 }
  0x9b   :  { %v68_v29 = vcombine.low %v62_v23, %v65_v24  ;;  %v146_v30 = vcombine.low %v65_v24, %v65_v24  ;;  %v84_v31 = vsel %vm59_vm1, %v77_v25, 0.0  ;;  %v85_v32 = vsel %vm59_vm1, %v78_v26, 0.0 }
  0x9c   :  { %v83_v35 = vadd.f32 %v82_v28, %v81_v27  ;;  %v86_v36 = vadd.f32 %v85_v32, %v84_v31 }
  0x9d   :  { %v99_v33 = vsel %vm59_vm1, %v68_v29, 0.0  ;;  %v100_v34 = vsel %vm59_vm1, %v146_v30, 0.0 }
  0x9e   :  { %v101_v37 = vadd.f32 %v100_v34, %v99_v33  ;;  %v89_v38 = vcombine.low %v83_v35, %v86_v36  ;;  %v147_v39 = vcombine.low %v86_v36, %v86_v36 }
  0xa0   :  { %102 = vadd.xlane.f32.xlu0 %v101_v37  ;;  %v108_v40 = vsel %vm59_vm1, %v89_v38, 0.0  ;;  %v109_v41 = vsel %vm59_vm1, %v147_v39, 0.0 }
  0xa1   :  { %v110_v42 = vadd.f32 %v109_v41, %v108_v40 }
  0xa3   :  { %111 = vadd.xlane.f32.xlu1 %v110_v42 }
 0x129   :  { %v103_v44 = vpop.xlane.xlu0 %102 }
 0x12a   :  { %v114_v45 = vmul.f32 0.001953125, %v103_v44 }
 0x12c   :  { %v115_v46 = vmul.f32 512.0, %v114_v45  ;;  %v129_v47 = vadd.f32 %v128_v43, %v114_v45  ;;  %v112_v50 = vpop.xlane.xlu1 %111 }
 0x12e   :  { %v130_v48 = vsub.f32 0.0, %v129_v47  ;;  %v116_v49 = vmul.f32 %v115_v46, %v114_v45 }
 0x130   :  { %132 = vst.msk [vmem:[%s225_s1] sm:$0xf] %vm31_vm0, %v130_v48  ;;  %v117_v51 = vsub.f32 %v112_v50, %v116_v49 }
 0x132   :  { %v119_v52 = vmul.f32 0.0019569471, %v117_v51 }
 0x134   :  { %v120_v53 = vmax.f32 %v119_v52, 0.0 }
 0x136   :  { %154 = vrsqrt.f32 %v120_v53  ;;  %vm123_vm2 = vcmp.eq.f32.partialorder %v120_v53, inf  ;;  %v126_v56 = vand.u32 2147483648, %v120_v53  ;;  %vm125_vm3 = vcmp.eq.f32.partialorder %v120_v53, 0.0 }
 0x143   :  { %v155_v54 = vpop.eup %154 }
 0x144   :  { %v122_v55 = vmul.f32 %v155_v54, %v120_v53 }
 0x146   :  { %v124_v57 = vsel %vm123_vm2, %v120_v53, %v122_v55 }
 0x147   :  { %v127_v58 = vsel %vm125_vm3, %v126_v56, %v124_v57 }
 0x148   :  { %v133_v59 = vadd.f32 1e-06, %v127_v58 }
 0x14a   :  { %156 = vrcp.f32 %v133_v59 }
 0x157   :  { %v157_v60 = vpop.eup %156 }
 0x158   :  { %136 = vst.msk [vmem:[%s226_s2] sm:$0xf] %vm31_vm0, %v157_v60 }
 0x159   :  { %145 = vsyncpa [#allocation6], 1 }

</bundles_post_ra>
